<compile_context>
chip_gen: v5e
topology: v5e:2x2
jax: 0.10.0
libtpu: 0.0.40
codegen_flags: <defaults>
</compile_context>

<pallas_src>
import jax
import jax.numpy as jnp
from jax.experimental import pallas as pl
from jax.experimental.pallas import tpu as pltpu


def _round_up(x, m):
    return ((x + m - 1) // m) * m


def _classification_kernel(x_ref, w1_ref, b1_ref, w2_ref, b2_ref, o_ref):
    # fc1: bf16 MXU operands, f32 accumulation; bias + ReLU in f32 (VPU).
    h = jnp.dot(x_ref[...], w1_ref[...], preferred_element_type=jnp.float32)
    h = jnp.maximum(h + b1_ref[...], 0.0)

    # fc2: cast h back to bf16 (halves vreg pressure, full-rate MXU), f32 acc.
    logits = jnp.dot(h.astype(jnp.bfloat16), w2_ref[...],
                     preferred_element_type=jnp.float32)
    # Padded class columns carry a -1e30 bias -> effectively -inf logits.
    logits = logits + b2_ref[...]

    # log_softmax over the class axis (lane axis, 128-wide, full vregs).
    m = jnp.max(logits, axis=-1, keepdims=True)
    shifted = logits - m
    lse = jnp.log(jnp.sum(jnp.exp(shifted), axis=-1, keepdims=True))
    o_ref[...] = (shifted - lse).astype(o_ref.dtype)


def classification_forward(x, w1, b1, w2, b2, *, block_b=256):
    """x: (B, E) f32; w1: (E, 256); b1: (256,); w2: (256, C); b2: (C,)."""
    B, E = x.shape
    H = w1.shape[1]
    C = w2.shape[1]

    # Lane-dense class dim (multiple of 128).
    C_pad = max(128, _round_up(C, 128))
    # Batch tile: multiple of 8 (sublane), capped to bound VMEM / vreg pressure.
    TB = min(block_b, _round_up(B, 8))
    B_pad = _round_up(B, TB)

    # Wrapper-side padding / casting (bf16 MXU operands, f32 biases).
    x_p = jnp.pad(x.astype(jnp.bfloat16), ((0, B_pad - B), (0, 0)))
    w1_bf = w1.astype(jnp.bfloat16)
    b1_2d = b1.reshape(1, H).astype(jnp.float32)
    w2_p = jnp.pad(w2.astype(jnp.bfloat16), ((0, 0), (0, C_pad - C)))
    b2_p = jnp.pad(b2.reshape(1, C).astype(jnp.float32),
                   ((0, 0), (0, C_pad - C)), constant_values=-1e30)

    grid = (B_pad // TB,)

    flops = 2 * B_pad * E * H + 2 * B_pad * H * C_pad
    transcendentals = B_pad * C_pad + B_pad                    # exp + log
    bytes_accessed = (x_p.size * 2 + w1_bf.size * 2 + w2_p.size * 2
                      + b1_2d.size * 4 + b2_p.size * 4
                      + B_pad * C_pad * 4)

    out_padded = pl.pallas_call(
        _classification_kernel,
        out_shape=jax.ShapeDtypeStruct((B_pad, C_pad), jnp.float32),
        grid_spec=pl.GridSpec(
            grid=grid,
            in_specs=[
                pl.BlockSpec((TB, E), lambda i: (i, 0)),        # x: batch-tiled
                pl.BlockSpec((E, H), lambda i: (0, 0)),         # w1: resident
                pl.BlockSpec((1, H), lambda i: (0, 0)),         # b1: resident
                pl.BlockSpec((H, C_pad), lambda i: (0, 0)),     # w2: resident
                pl.BlockSpec((1, C_pad), lambda i: (0, 0)),     # b2: resident
            ],
            out_specs=pl.BlockSpec((TB, C_pad), lambda i: (i, 0)),
        ),
        compiler_params=pltpu.CompilerParams(
            dimension_semantics=("parallel",),
        ),
        cost_estimate=pl.CostEstimate(
            flops=int(flops),
            transcendentals=int(transcendentals),
            bytes_accessed=int(bytes_accessed),
        ),
    )(x_p, w1_bf, b1_2d, w2_p, b2_p)

    return out_padded[:B, :C]


def _pytorch_linear_init(key, fan_in, fan_out):
    """Deterministic init mimicking torch.nn.Linear: U(-1/sqrt(fan_in), 1/sqrt(fan_in))."""
    kw, kb = jax.random.split(key)
    bound = 1.0 / jnp.sqrt(jnp.float32(fan_in))
    w = jax.random.uniform(kw, (fan_in, fan_out), jnp.float32, -bound, bound)
    b = jax.random.uniform(kb, (fan_out,), jnp.float32, -bound, bound)
    return w, b


if __name__ == "__main__":
    key = jax.random.PRNGKey(0)
    k_x, k_fc1, k_fc2 = jax.random.split(key, 3)

    B, EMB, HIDDEN, NUM_CLASSES = 8, 32, 256, 10

    x = jax.random.normal(k_x, (B, EMB), jnp.float32)
    w1, b1 = _pytorch_linear_init(k_fc1, EMB, HIDDEN)
    w2, b2 = _pytorch_linear_init(k_fc2, HIDDEN, NUM_CLASSES)

    out = classification_forward(x, w1, b1, w2, b2)
    out = jax.block_until_ready(out)

    # Reference check in plain JAX (f32 end-to-end); kernel uses bf16 MXU
    # operands with f32 accumulation, so tolerance is loosened accordingly.
    h_ref = jnp.maximum(x @ w1 + b1, 0.0)
    logits_ref = h_ref @ w2 + b2
    ref = jax.nn.log_softmax(logits_ref, axis=1)

    assert out.shape == (B, NUM_CLASSES)
    assert bool(jnp.all(jnp.isfinite(out)))
    assert jnp.allclose(out, ref, atol=2e-2, rtol=2e-2), (
        f"max abs diff {jnp.max(jnp.abs(out - ref))}")

    print("KERNEL_OK")
</pallas_src>

<mosaic_0001>
module attributes {stable_mosaic.version = 11 : i64} {
  func.func @_classification_kernel(%arg0: i32, %arg1: memref<8x32xbf16, #tpu.memory_space<vmem>>, %arg2: memref<32x256xbf16, #tpu.memory_space<vmem>>, %arg3: memref<1x256xf32, #tpu.memory_space<vmem>>, %arg4: memref<256x128xbf16, #tpu.memory_space<vmem>>, %arg5: memref<1x128xf32, #tpu.memory_space<vmem>>, %arg6: memref<8x128xf32, #tpu.memory_space<vmem>>) attributes {dimension_semantics = [#tpu.dimension_semantics<parallel>], iteration_bounds = array<i64: 1>, scalar_prefetch = 0 : i64, scratch_operands = 0 : i64, tpu.core_type = #tpu.core_type<tc>, window_params = [{transform_indices = @transform_0, window_bounds = array<i64: 8, 32>}, {pipeline_mode = #tpu.pipeline_mode<synchronous>, transform_indices = @transform_1, window_bounds = array<i64: 32, 256>}, {pipeline_mode = #tpu.pipeline_mode<synchronous>, transform_indices = @transform_2, window_bounds = array<i64: 1, 256>}, {pipeline_mode = #tpu.pipeline_mode<synchronous>, transform_indices = @transform_3, window_bounds = array<i64: 256, 128>}, {pipeline_mode = #tpu.pipeline_mode<synchronous>, transform_indices = @transform_4, window_bounds = array<i64: 1, 128>}, {transform_indices = @transform_5, window_bounds = array<i64: 8, 128>}]} {
    %c0 = arith.constant 0 : index
    %c0_0 = arith.constant 0 : index
    %0 = vector.load %arg1[%c0, %c0_0] : memref<8x32xbf16, #tpu.memory_space<vmem>>, vector<8x32xbf16>
    %c0_1 = arith.constant 0 : index
    %c0_2 = arith.constant 0 : index
    %1 = vector.load %arg2[%c0_1, %c0_2] : memref<32x256xbf16, #tpu.memory_space<vmem>>, vector<32x256xbf16>
    %cst = arith.constant dense<0.000000e+00> : vector<8x256xf32>
    %2 = tpu.matmul %0, %1, %cst {dimension_numbers = #tpu.dot_dimension_numbers<[1], [0], [0], [1], [0, 0, 1, 1], [], []>} : vector<8x32xbf16>, vector<32x256xbf16>, vector<8x256xf32> -> vector<8x256xf32>
    %c0_3 = arith.constant 0 : index
    %c0_4 = arith.constant 0 : index
    %3 = vector.load %arg3[%c0_3, %c0_4] : memref<1x256xf32, #tpu.memory_space<vmem>>, vector<1x256xf32>
    %4 = vector.broadcast %3 : vector<1x256xf32> to vector<8x256xf32>
    %5 = arith.addf %2, %4 : vector<8x256xf32>
    %cst_5 = arith.constant 0.000000e+00 : f32
    %6 = vector.broadcast %cst_5 : f32 to vector<8x256xf32>
    %7 = arith.maximumf %5, %6 : vector<8x256xf32>
    %8 = arith.truncf %7 : vector<8x256xf32> to vector<8x256xbf16>
    %c0_6 = arith.constant 0 : index
    %c0_7 = arith.constant 0 : index
    %9 = vector.load %arg4[%c0_6, %c0_7] : memref<256x128xbf16, #tpu.memory_space<vmem>>, vector<256x128xbf16>
    %cst_8 = arith.constant dense<0.000000e+00> : vector<8x128xf32>
    %10 = tpu.matmul %8, %9, %cst_8 {dimension_numbers = #tpu.dot_dimension_numbers<[1], [0], [0], [1], [0, 0, 1, 1], [], []>} : vector<8x256xbf16>, vector<256x128xbf16>, vector<8x128xf32> -> vector<8x128xf32>
    %c0_9 = arith.constant 0 : index
    %c0_10 = arith.constant 0 : index
    %11 = vector.load %arg5[%c0_9, %c0_10] : memref<1x128xf32, #tpu.memory_space<vmem>>, vector<1x128xf32>
    %12 = vector.broadcast %11 : vector<1x128xf32> to vector<8x128xf32>
    %13 = arith.addf %10, %12 : vector<8x128xf32>
    %cst_11 = arith.constant dense<0xFF800000> : vector<8xf32>
    %14 = vector.multi_reduction <maximumf>, %13, %cst_11 [1] : vector<8x128xf32> to vector<8xf32>
    %15 = vector.shape_cast %14 : vector<8xf32> to vector<8x1xf32>
    %16 = vector.broadcast %15 : vector<8x1xf32> to vector<8x128xf32>
    %17 = arith.subf %13, %16 : vector<8x128xf32>
    %18 = math.exp %17 : vector<8x128xf32>
    %cst_12 = arith.constant dense<0.000000e+00> : vector<8xf32>
    %19 = vector.multi_reduction <add>, %18, %cst_12 [1] : vector<8x128xf32> to vector<8xf32>
    %20 = vector.shape_cast %19 : vector<8xf32> to vector<8x1xf32>
    %21 = math.log %20 : vector<8x1xf32>
    %22 = vector.broadcast %21 : vector<8x1xf32> to vector<8x128xf32>
    %23 = arith.subf %17, %22 : vector<8x128xf32>
    %c0_13 = arith.constant 0 : index
    %c0_14 = arith.constant 0 : index
    %24 = vector.load %arg6[%c0_13, %c0_14] : memref<8x128xf32, #tpu.memory_space<vmem>>, vector<8x128xf32>
    tpu.vector_store %arg6[%c0_13, %c0_14], %23 {strides = array<i32>} : memref<8x128xf32, #tpu.memory_space<vmem>>, vector<8x128xf32>,
    return
  }
  func.func @transform_0(%arg0: i32) -> (i32, i32) {
    %c0_i32 = arith.constant 0 : i32
    %c0_i32_0 = arith.constant 0 : i32
    return %arg0, %c0_i32 : i32, i32
  }
  func.func @transform_1(%arg0: i32) -> (i32, i32) {
    %c0_i32 = arith.constant 0 : i32
    %c0_i32_0 = arith.constant 0 : i32
    %c0_i32_1 = arith.constant 0 : i32
    return %c0_i32, %c0_i32_0 : i32, i32
  }
  func.func @transform_2(%arg0: i32) -> (i32, i32) {
    %c0_i32 = arith.constant 0 : i32
    %c0_i32_0 = arith.constant 0 : i32
    %c0_i32_1 = arith.constant 0 : i32
    return %c0_i32, %c0_i32_0 : i32, i32
  }
  func.func @transform_3(%arg0: i32) -> (i32, i32) {
    %c0_i32 = arith.constant 0 : i32
    %c0_i32_0 = arith.constant 0 : i32
    %c0_i32_1 = arith.constant 0 : i32
    return %c0_i32, %c0_i32_0 : i32, i32
  }
  func.func @transform_4(%arg0: i32) -> (i32, i32) {
    %c0_i32 = arith.constant 0 : i32
    %c0_i32_0 = arith.constant 0 : i32
    %c0_i32_1 = arith.constant 0 : i32
    return %c0_i32, %c0_i32_0 : i32, i32
  }
  func.func @transform_5(%arg0: i32) -> (i32, i32) {
    %c0_i32 = arith.constant 0 : i32
    %c0_i32_0 = arith.constant 0 : i32
    return %arg0, %c0_i32 : i32, i32
  }
}

</mosaic_0001>

<bundles_post_ra>
// kernel: tpu_custom_call.1
= control target key start
LH: loop header
LB: loop body
LE: loop exit
PB: predicated region body
PF: predicated region fallthrough
CT: control target
= control target key end

     0   :  { %10 = vsyncpa [#allocation3], 0  ;;  %s635_s0 = inlined_call_operand.hbm [shape: bf16[8,32], index: 0, kind: input, shape index: {}]   ;;  %s636_s1 = inlined_call_operand.hbm [shape: bf16[32,256], index: 1, kind: input, shape index: {}]   ;;  %s637_s2 = inlined_call_operand.hbm [shape: f32[1,256], index: 2, kind: input, shape index: {}]   ;;  %s638_s3 = inlined_call_operand.hbm [shape: bf16[256,128], index: 3, kind: input, shape index: {}]   ;;  %s639_s4 = inlined_call_operand.vmem [shape: f32[1,128], index: 4, kind: input, shape index: {}]   ;;  %s640_s5 = inlined_call_operand.hbm [shape: f32[8,128], index: 5, kind: output, shape index: {}]  }
   0x1   :  { %11 = vsyncpa [#allocation6], 0 }
   0x2   :  { %12 = vsyncpa [#allocation9], 0  ;;  %s29_s20 = sshll.u32 %s636_s1, 4  ;;  %s30_s20 = int_to_ptr.hbm [resolvable:$true] %s29_s20 }
   0x3   :  { %13 = vsyncpa [#allocation4], 0  ;;  %s578_s21 = smov [#allocation5]   ;;  %s19_s25 = sshll.u32 %s635_s0, 4  ;;  %s20_s25 = int_to_ptr.hbm [resolvable:$true] %s19_s25 }
   0x4   :  { %s31_s22 = sshll.u32 %s578_s21, 4  ;;  %s579_s26 = smov 128   ;;  %s32_s22 = int_to_ptr.vmem [resolvable:$true] %s31_s22 }
   0x5   :  { %s580_s27 = smov 8   ;;  %s581_s28 = smov [#allocation2]  }
   0x6   :  { %37 = dma.hbm_to_vmem [thread:$0]  %s30_s20, 512, %s32_s22, [#allocation6], %s579_s26, %s579_s26, %s580_s27  }
   0x7   :  { %s21_s29 = sshll.u32 %s581_s28, 4  ;;  %s43_s7 = sshll.u32 %s637_s2, 4  ;;  %s22_s29 = int_to_ptr.vmem [resolvable:$true] %s21_s29  ;;  %s44_s7 = int_to_ptr.hbm [resolvable:$true] %s43_s7 }
   0x8   :  { %24 = dma.hbm_to_vmem [thread:$0]  %s20_s25, 64, %s22_s29, [#allocation3]  }
   0x9   :  { %s53_s9 = sshll.u32 %s638_s3, 4  ;;  %s582_s10 = smov [#allocation7]   ;;  %s54_s9 = int_to_ptr.hbm [resolvable:$true] %s53_s9 }
   0xa   :  { %s45_s11 = sshll.u32 %s582_s10, 4  ;;  %s583_s0 = smov [#allocation8]   ;;  %s46_s11 = int_to_ptr.vmem [resolvable:$true] %s45_s11 }
   0xb   :  { %48 = dma.hbm_to_vmem [thread:$0]  %s44_s7, 32, %s46_s11, [#allocation6]  }
   0xc   :  { %s55_s12 = sshll.u32 %s583_s0, 4  ;;  %s584_s13 = smov 64   ;;  %s56_s12 = int_to_ptr.vmem [resolvable:$true] %s55_s12 }
   0xd   :  { %s585_s14 = smov 4  }
   0xe   :  { %61 = dma.hbm_to_vmem [thread:$0]  %s54_s9, 2048, %s56_s12, [#allocation9], %s584_s13, %s584_s13, %s585_s14  }
   0xf   :  { %570 = dma.done.wait [#allocation3], 64  }
  0x10   :  { %571 = vsyncadd [#allocation3], 4294967232 }
  0x11   :  { %572 = dma.done.wait [#allocation6], 544  }
  0x12   :  { %573 = vsyncadd [#allocation6], 4294966752 }
  0x13   :  { %574 = dma.done.wait [#allocation9], 2048  }
  0x14   :  { %575 = vsyncadd [#allocation9], 4294965248  ;;  %v344_v0 = vld [vmem:[#allocation5 + $0x10] sm:$0xf]  ;;  %v419_v1 = vld [vmem:[#allocation5 + $0x14] sm:$0xf0] }
  0x15   :  { %v418_v2 = vld [vmem:[#allocation5 + $0x14] sm:$0xf]  ;;  %v345_v3 = vor.u32 %v419_v1, %v344_v0  ;;  %v346_v4 = vld [vmem:[#allocation5 + $0x18] sm:$0xf0]  ;;  %v336_v5 = vld [vmem:[#allocation5] sm:$0xf] }
  0x16   :  { %v417_v6 = vld [vmem:[#allocation5 + $0x4] sm:$0xf0]  ;;  %v349_v7 = vor.u32 %v418_v2, %v346_v4  ;;  %v416_v8 = vld [vmem:[#allocation5 + $0x4] sm:$0xf]  ;;  %v338_v9 = vld [vmem:[#allocation5 + $0x8] sm:$0xf0] }
  0x17   :  { %122 = vmatpush.bf16.msra.mxu0 %v345_v3  ;;  %v337_v10 = vor.u32 %v417_v6, %v336_v5  ;;  %v427_v11 = vld [vmem:[#allocation8 + $0x38] sm:$0xff]  ;;  %v341_v13 = vor.u32 %v416_v8, %v338_v9  ;;  %v426_v14 = vld [vmem:[#allocation8 + $0x30] sm:$0xff]  ;;  %vm112_vm0 = vcmask 261120   ;;  %v425_v17 = vld [vmem:[#allocation8 + $0x28] sm:$0xff]  ;;  %s586_s15 = smov [#allocation10]   ;;  %s322_s18 = sshll.u32 %s640_s5, 4  ;;  %s323_s18 = int_to_ptr.hbm [resolvable:$true] %s322_s18 }
  0x18   :  { %v435_v12 = vld [vmem:[#allocation8 + $0x78] sm:$0xff]  ;;  %135 = vmatpush.bf16.msra.mxu1 %v349_v7  ;;  %278 = vmatpush.bf16.msra.mxu2 %v427_v11  ;;  %v434_v15 = vld [vmem:[#allocation8 + $0x70] sm:$0xff]  ;;  %v433_v18 = vld [vmem:[#allocation8 + $0x68] sm:$0xff]  ;;  %s320_s16 = sshll.u32 %s586_s15, 4  ;;  %s321_s16 = int_to_ptr.vmem [resolvable:$true] %s320_s16 }
  0x19   :  { %291 = vmatpush.bf16.msra.mxu3 %v435_v12  ;;  %v81_v16 = vld [vmem:[#allocation2] sm:$0xf]  ;;  %v424_v19 = vld [vmem:[#allocation8 + $0x20] sm:$0xff]  ;;  %v422_v23 = vld [vmem:[#allocation8 + $0x10] sm:$0xff] }
  0x1a   :  { %v432_v20 = vld [vmem:[#allocation8 + $0x60] sm:$0xff]  ;;  %v423_v21 = vld [vmem:[#allocation8 + $0x18] sm:$0xff]  ;;  %v430_v24 = vld [vmem:[#allocation8 + $0x50] sm:$0xff] }
  0x1b   :  { %123 = vmatpush.bf16.msra.mxu0 %v337_v10  ;;  %v431_v22 = vld [vmem:[#allocation8 + $0x58] sm:$0xff]  ;;  %v421_v25 = vld [vmem:[#allocation8 + $0x8] sm:$0xff]  ;;  %v420_v27 = vld [vmem:[#allocation8] sm:$0xff] }
  0x1c   :  { %136 = vmatpush.bf16.msra.mxu1 %v341_v13  ;;  %279 = vmatpush.bf16.msra.mxu2 %v426_v14  ;;  %v429_v26 = vld [vmem:[#allocation8 + $0x48] sm:$0xff]  ;;  %v428_v28 = vld [vmem:[#allocation8 + $0x40] sm:$0xff]  ;;  %v86_v29 = vld [vmem:[#allocation7] sm:$0x3] }
  0x1d   :  { %292 = vmatpush.bf16.msra.mxu3 %v434_v15  ;;  %v88_v30 = vperm.slane %v86_v29, 0  ;;  %v89_v31 = vperm.slane %v86_v29, 1  ;;  %v445_v42 = vld [vmem:[%s639_s4] ss:$0 sm:$0xff] }
  0x1e   :  { %350 = vmatmul.msk.bf16.vlgmr.msra.gmra.mxu0 %vm112_vm0, %v81_v16 }
  0x1f   :  { %351 = vmatmul.msk.bf16.vlgmr.msra.gmra.mxu1 %vm112_vm0, %v81_v16 }
  0x20   :  { %280 = vmatpush.bf16.msra.mxu2 %v425_v17 }
  0x21   :  { %293 = vmatpush.bf16.msra.mxu3 %v433_v18 }
  0x24   :  { %281 = vmatpush.bf16.msra.mxu2 %v424_v19 }
  0x25   :  { %294 = vmatpush.bf16.msra.mxu3 %v432_v20 }
  0x28   :  { %282 = vmatpush.bf16.msra.mxu2 %v423_v21 }
  0x29   :  { %295 = vmatpush.bf16.msra.mxu3 %v431_v22 }
  0x2c   :  { %283 = vmatpush.bf16.msra.mxu2 %v422_v23 }
  0x2d   :  { %296 = vmatpush.bf16.msra.mxu3 %v430_v24 }
  0x30   :  { %284 = vmatpush.bf16.msra.mxu2 %v421_v25 }
  0x31   :  { %297 = vmatpush.bf16.msra.mxu3 %v429_v26 }
  0x34   :  { %285 = vmatpush.bf16.msra.mxu2 %v420_v27 }
  0x35   :  { %298 = vmatpush.bf16.msra.mxu3 %v428_v28 }
  0x9b   :  { %v125_v32 = vpop.f32.mrf.mxu0 }
  0x9c   :  { %v126_v33 = vadd.f32 %v125_v32, %v88_v30  ;;  %v138_v34 = vpop.f32.mrf.mxu1 }
  0x9d   :  { %v139_v35 = vadd.f32 %v138_v34, %v89_v31 }
  0x9e   :  { %v142_v36 = vmax.f32 %v126_v33, 0.0 }
  0x9f   :  { %v143_v37 = vmax.f32 %v139_v35, 0.0 }
  0xa0   :  { %v144_v38 = vpack.c.bf16 %v142_v36, %v142_v36 }
  0xa1   :  { %v145_v39 = vpack.c.bf16 %v143_v37, %v143_v37 }
  0xa2   :  { %286 = vmatmul.bf16.vlgmr.msra.gmra.mxu2 %v144_v38 }
  0xa3   :  { %299 = vmatmul.bf16.vlgmr.msra.gmra.mxu3 %v145_v39  ;;  %v127_v40 = vpop.f32.mrf.mxu0 }
  0xa4   :  { %v140_v41 = vpop.f32.mrf.mxu1 }
 0x125   :  { %v287_v43 = vpop.f32.mrf.mxu2 }
 0x126   :  { %v288_v44 = vadd.f32 %v445_v42, %v287_v43  ;;  %v300_v45 = vpop.f32.mrf.mxu3 }
 0x128   :  { %v301_v46 = vadd.f32 %v300_v45, %v288_v44 }
 0x12a   :  { %304 = vmax.xlane.f32.xlu0 %v301_v46 }
 0x12d   :  { %v289_v47 = vpop.f32.mrf.mxu2 }
 0x12e   :  { %v302_v48 = vpop.f32.mrf.mxu3 }
 0x19d   :  { %v305_v49 = vpop.xlane.xlu0 %304 }
 0x19e   :  { %v306_v50 = vsub.f32 %v301_v46, %v305_v49 }
 0x1a0   :  { %v307_v51 = vmul.f32 1.442695, %v306_v50 }
 0x1a2   :  { %446 = vpow2.f32 %v307_v51 }
 0x1a8   :  { %v447_v52 = vpop.eup %446 }
 0x1a9   :  { %309 = vadd.xlane.f32.xlu0 %v447_v52 }
 0x21c   :  { %v310_v53 = vpop.xlane.xlu0 %309 }
 0x21d   :  { %448 = vlog2.f32 %v310_v53 }
 0x223   :  { %v449_v54 = vpop.eup %448 }
 0x224   :  { %v312_v55 = vmul.f32 0.6931472, %v449_v54 }
 0x226   :  { %v313_v56 = vsub.f32 %v306_v50, %v312_v55 }
 0x228   :  { %314 = vst [vmem:[#allocation10] sm:$0xff] %v313_v56 }
 0x229   :  { %325 = dma.vmem_to_hbm [thread:$0]  %s321_s16, 128, %s323_s18, [#allocation4]  }
 0x22a   :  { %576 = dma.done.wait [#allocation4], 128  }
 0x22b   :  { %577 = vsyncadd [#allocation4], 4294967168 }
 0x22c   :  { %330 = vsyncpa [#allocation3], 1 }
 0x22d   :  { %331 = vsyncpa [#allocation6], 1 }
 0x22e   :  { %332 = vsyncpa [#allocation9], 1 }
 0x22f   :  { %333 = vsyncpa [#allocation4], 1 }

</bundles_post_ra>
